<compile_context>
chip_gen: v7x
topology: tpu7x:2x2x1
jax: 0.10.0
libtpu: 0.0.40
codegen_flags: <defaults>
</compile_context>

<pallas_src>
import functools
import math
import random

import jax
import jax.numpy as jnp
from jax.experimental import pallas as pl
from jax.experimental.pallas import tpu as pltpu


def _round_up(v: int, m: int) -> int:
    return ((v + m - 1) // m) * m


# ----------------------------------------------------------------------------
# Pallas kernel: one MXU matmul per (row-tile, lane-tile) grid step.
# ----------------------------------------------------------------------------
def _apply_grid_kernel(x_ref, s_ref, o_ref):
    # x_ref: (tile_m, K)    -- tile_m rows of the flattened (B*C, H*W) input
    # s_ref: (K, tile_n)    -- interpolation weights, float32
    # o_ref: (tile_m, tile_n)
    x = x_ref[...].astype(jnp.float32)
    o_ref[...] = jnp.dot(
        x, s_ref[...], preferred_element_type=jnp.float32
    ).astype(o_ref.dtype)


# ----------------------------------------------------------------------------
# Build the sampling matrix (traced; angle is a dynamic scalar -> no recompile).
# ----------------------------------------------------------------------------
def _sampling_matrix(rads, H: int, W: int, mode: str) -> jnp.ndarray:
    """(H*W, H*W) float32 S_T with out_flat = x_flat @ S_T.

    Matches F.affine_grid(theta, align_corners=True) with
    theta = [[cos, -sin, 0], [sin, cos, 0]] followed by
    F.grid_sample(mode=mode, padding_mode='zeros', align_corners=True).
    """
    c = jnp.cos(rads)
    s = jnp.sin(rads)

    x_n = (jnp.linspace(-1.0, 1.0, W, dtype=jnp.float32) if W > 1
           else jnp.zeros((W,), jnp.float32))
    y_n = (jnp.linspace(-1.0, 1.0, H, dtype=jnp.float32) if H > 1
           else jnp.zeros((H,), jnp.float32))

    gx = c * x_n[None, :] - s * y_n[:, None]           # (H, W) normalized x
    gy = s * x_n[None, :] + c * y_n[:, None]           # (H, W) normalized y

    # un-normalize (align_corners=True)
    ix = ((gx + 1.0) * 0.5 * (W - 1)).reshape(-1)      # (H*W,) input col coord
    iy = ((gy + 1.0) * 0.5 * (H - 1)).reshape(-1)      # (H*W,) input row coord

    def corner(yc, xc, w):
        valid = (xc >= 0) & (xc <= W - 1) & (yc >= 0) & (yc <= H - 1)
        flat = (jnp.clip(yc, 0, H - 1).astype(jnp.int32) * W
                + jnp.clip(xc, 0, W - 1).astype(jnp.int32))
        return flat, w * valid.astype(jnp.float32)     # zeros padding for OOB

    if mode == "nearest":
        corners = [corner(jnp.round(iy), jnp.round(ix), jnp.ones_like(ix))]
    else:  # bilinear
        x0 = jnp.floor(ix); x1 = x0 + 1.0
        y0 = jnp.floor(iy); y1 = y0 + 1.0
        wx1 = ix - x0; wx0 = 1.0 - wx1
        wy1 = iy - y0; wy0 = 1.0 - wy1
        corners = [corner(y0, x0, wy0 * wx0), corner(y0, x1, wy0 * wx1),
                   corner(y1, x0, wy1 * wx0), corner(y1, x1, wy1 * wx1)]

    q = jnp.arange(H * W, dtype=jnp.int32)[:, None]    # input flat index
    s_t = jnp.zeros((H * W, H * W), jnp.float32)
    for flat, w in corners:                            # one_hot built by compare-vs-iota
        s_t = s_t + (q == flat[None, :]).astype(jnp.float32) * w[None, :]
    return s_t


# ----------------------------------------------------------------------------
# Wrapper: one jit per (shape, mode); angle is a dynamic argument.
# ----------------------------------------------------------------------------
@functools.partial(jax.jit, static_argnames=("mode",))
def rotate_tensor(x: jnp.ndarray, rads, mode: str = "nearest") -> jnp.ndarray:
    B, C, H, W = x.shape
    M, K = B * C, H * W
    N = H * W                                # rotation preserves the spatial shape
    rads = jnp.asarray(rads, dtype=jnp.float32)

    s_t = _sampling_matrix(rads, H, W, mode)            # float32 weights

    # ---- tiling (re-derived from shapes; blocks stay small vs. VMEM limits,
    #      including v7x's 64 MiB/TC) ------------------------------------------
    tile_m = min(256, _round_up(M, 8))
    m_pad = _round_up(M, tile_m)
    n_pad = _round_up(N, 128)                            # lane-dense output
    tile_n = next(t for t in (1024, 512, 256, 128) if n_pad % t == 0)

    x_flat = x.reshape(M, K)
    if m_pad != M:
        x_flat = jnp.pad(x_flat, ((0, m_pad - M), (0, 0)))
    if n_pad != N:
        s_t = jnp.pad(s_t, ((0, 0), (0, n_pad - N)))

    out = pl.pallas_call(
        _apply_grid_kernel,
        out_shape=jax.ShapeDtypeStruct((m_pad, n_pad), x.dtype),
        grid_spec=pltpu.PrefetchScalarGridSpec(
            num_scalar_prefetch=0,
            grid=(m_pad // tile_m, n_pad // tile_n),
            in_specs=[
                pl.BlockSpec((tile_m, K), lambda i, j: (i, 0)),
                pl.BlockSpec((K, tile_n), lambda i, j: (0, j)),
            ],
            out_specs=pl.BlockSpec((tile_m, tile_n), lambda i, j: (i, j)),
        ),
        compiler_params=pltpu.CompilerParams(
            dimension_semantics=("parallel", "parallel")
        ),
    )(x_flat, s_t)

    return out[:M, :N].reshape(B, C, H, W)


class RotateTensorPallas:
    """JAX/Pallas equivalent of the PyTorch RotateTensor module."""

    def __init__(self, max_deg: float, interpolate: str = "nearest", seed: int = 0):
        assert interpolate in ("nearest", "bilinear")
        self.max_rads = math.radians(max_deg)
        self.interpolate = interpolate
        self._rng = random.Random(seed)   # deterministic stand-in for random.uniform

    def __call__(self, x: jnp.ndarray) -> jnp.ndarray:
        rads = self._rng.uniform(-self.max_rads, self.max_rads)
        # Output shape is angle-independent, so the jitted rotate_tensor is
        # compiled once per (shape, mode) and reused for every random angle.
        return rotate_tensor(x, jnp.float32(rads), mode=self.interpolate)


if __name__ == "__main__":
    key = jax.random.PRNGKey(0)
    B, C, H, W = 2, 4, 16, 16
    x = jax.random.normal(key, (B, C, H, W), dtype=jnp.float32)

    # sanity: zero rotation is the identity for both modes (align_corners=True)
    ident_n = jax.block_until_ready(rotate_tensor(x, jnp.float32(0.0), mode="nearest"))
    ident_b = jax.block_until_ready(rotate_tensor(x, jnp.float32(0.0), mode="bilinear"))
    assert ident_n.shape == x.shape and ident_b.shape == x.shape
    assert jnp.allclose(ident_n, x, atol=5e-2), "nearest zero-rotation mismatch"
    assert jnp.allclose(ident_b, x, atol=5e-2), "bilinear zero-rotation mismatch"

    # random rotation through the module (PyTorch default mode is 'nearest')
    module = RotateTensorPallas(max_deg=30.0, interpolate="nearest", seed=0)
    out = jax.block_until_ready(module(x))
    assert out.shape == (B, C, H, W)
    assert bool(jnp.all(jnp.isfinite(out)))

    print("KERNEL_OK")
</pallas_src>

<mosaic_0001>
module attributes {stable_mosaic.version = 11 : i64} {
  func.func @_apply_grid_kernel(%arg0: i32, %arg1: i32, %arg2: memref<8x256xf32, #tpu.memory_space<vmem>>, %arg3: memref<256x256xf32, #tpu.memory_space<vmem>>, %arg4: memref<8x256xf32, #tpu.memory_space<vmem>>) attributes {dimension_semantics = [#tpu.dimension_semantics<parallel>, #tpu.dimension_semantics<parallel>], iteration_bounds = array<i64: 1, 1>, scalar_prefetch = 0 : i64, scratch_operands = 0 : i64, tpu.core_type = #tpu.core_type<tc>, window_params = [{transform_indices = @transform_0, window_bounds = array<i64: 8, 256>}, {transform_indices = @transform_1, window_bounds = array<i64: 256, 256>}, {transform_indices = @transform_2, window_bounds = array<i64: 8, 256>}]} {
    %c0 = arith.constant 0 : index
    %c0_0 = arith.constant 0 : index
    %0 = vector.load %arg2[%c0, %c0_0] : memref<8x256xf32, #tpu.memory_space<vmem>>, vector<8x256xf32>
    %c0_1 = arith.constant 0 : index
    %c0_2 = arith.constant 0 : index
    %1 = vector.load %arg3[%c0_1, %c0_2] : memref<256x256xf32, #tpu.memory_space<vmem>>, vector<256x256xf32>
    %cst = arith.constant dense<0.000000e+00> : vector<8x256xf32>
    %2 = tpu.matmul %0, %1, %cst {dimension_numbers = #tpu.dot_dimension_numbers<[1], [0], [0], [1], [0, 0, 1, 1], [], []>} : vector<8x256xf32>, vector<256x256xf32>, vector<8x256xf32> -> vector<8x256xf32>
    %c0_3 = arith.constant 0 : index
    %c0_4 = arith.constant 0 : index
    %3 = vector.load %arg4[%c0_3, %c0_4] : memref<8x256xf32, #tpu.memory_space<vmem>>, vector<8x256xf32>
    tpu.vector_store %arg4[%c0_3, %c0_4], %2 {strides = array<i32>} : memref<8x256xf32, #tpu.memory_space<vmem>>, vector<8x256xf32>,
    return
  }
  func.func @transform_0(%arg0: i32, %arg1: i32) -> (i32, i32) {
    %c0_i32 = arith.constant 0 : i32
    %c0_i32_0 = arith.constant 0 : i32
    return %arg0, %c0_i32 : i32, i32
  }
  func.func @transform_1(%arg0: i32, %arg1: i32) -> (i32, i32) {
    %c0_i32 = arith.constant 0 : i32
    %c0_i32_0 = arith.constant 0 : i32
    return %c0_i32, %arg1 : i32, i32
  }
  func.func @transform_2(%arg0: i32, %arg1: i32) -> (i32, i32) {
    %c0_i32 = arith.constant 0 : i32
    return %arg0, %arg1 : i32, i32
  }
}

</mosaic_0001>

<bundles_post_ra>
// kernel: rotate_tensor.1
= control target key start
LH: loop header
LB: loop body
LE: loop exit
PB: predicated region body
PF: predicated region fallthrough
CT: control target
= control target key end

     0   :  { %s437_s1 = inlined_call_operand.vmem [shape: f32[256,256], index: 1, kind: input, shape index: {}]   ;;  %s438_s0 = inlined_call_operand.vmem [shape: f32[8,256], index: 0, kind: input, shape index: {}]   ;;  %s439_s2 = inlined_call_operand.vmem [shape: f32[8,256], index: 2, kind: output, shape index: {}]  }
   0x1   :  { %v14_v0 = vld [vmem:[%s437_s1 + $0x8] sm:$0xff]  ;;  %v16_v1 = vld [vmem:[%s437_s1 + $0x18] sm:$0xff]  ;;  %v13_v2 = vld [vmem:[%s437_s1] sm:$0xff] }
   0x2   :  { %v154_v3 = vpack.c.bf16 %v16_v1, %v14_v0  ;;  %v15_v4 = vld [vmem:[%s437_s1 + $0x10] sm:$0xff]  ;;  %v18_v5 = vld [vmem:[%s437_s1 + $0x28] sm:$0xff]  ;;  %v20_v6 = vld [vmem:[%s437_s1 + $0x38] sm:$0xff] }
   0x3   :  { %v156_v7 = vpack.c.bf16 %v15_v4, %v13_v2  ;;  %v158_v8 = vpack.c.bf16 %v20_v6, %v18_v5  ;;  %v17_v9 = vld [vmem:[%s437_s1 + $0x20] sm:$0xff]  ;;  %v19_v10 = vld [vmem:[%s437_s1 + $0x30] sm:$0xff]  ;;  %v22_v11 = vld [vmem:[%s437_s1 + $0x48] sm:$0xff] }
   0x4   :  { %155 = vmatprep.subr.bf16.mxu0 %v154_v3  ;;  %v24_v12 = vld [vmem:[%s437_s1 + $0x58] sm:$0xff]  ;;  %v160_v13 = vpack.c.bf16 %v19_v10, %v17_v9  ;;  %v21_v15 = vld [vmem:[%s437_s1 + $0x40] sm:$0xff]  ;;  %v23_v16 = vld [vmem:[%s437_s1 + $0x50] sm:$0xff] }
   0x5   :  { %157 = vmatpush1.bf16.msra.mxu0 %v156_v7  ;;  %v162_v14 = vpack.c.bf16 %v24_v12, %v22_v11  ;;  %v26_v17 = vld [vmem:[%s437_s1 + $0x68] sm:$0xff]  ;;  %v28_v18 = vld [vmem:[%s437_s1 + $0x78] sm:$0xff]  ;;  %v164_v19 = vpack.c.bf16 %v23_v16, %v21_v15  ;;  %v25_v21 = vld [vmem:[%s437_s1 + $0x60] sm:$0xff] }
   0x6   :  { %159 = vmatprep.subr.bf16.mxu0 %v158_v8  ;;  %v166_v20 = vpack.c.bf16 %v28_v18, %v26_v17  ;;  %v27_v22 = vld [vmem:[%s437_s1 + $0x70] sm:$0xff]  ;;  %v30_v23 = vld [vmem:[%s437_s1 + $0x88] sm:$0xff]  ;;  %v32_v24 = vld [vmem:[%s437_s1 + $0x98] sm:$0xff] }
   0x7   :  { %v168_v25 = vpack.c.bf16 %v27_v22, %v25_v21  ;;  %v170_v26 = vpack.c.bf16 %v32_v24, %v30_v23  ;;  %v29_v27 = vld [vmem:[%s437_s1 + $0x80] sm:$0xff]  ;;  %v31_v28 = vld [vmem:[%s437_s1 + $0x90] sm:$0xff]  ;;  %v34_v29 = vld [vmem:[%s437_s1 + $0xa8] sm:$0xff] }
   0x8   :  { %v36_v30 = vld [vmem:[%s437_s1 + $0xb8] sm:$0xff]  ;;  %v172_v31 = vpack.c.bf16 %v31_v28, %v29_v27  ;;  %v33_v33 = vld [vmem:[%s437_s1 + $0xa0] sm:$0xff]  ;;  %v35_v34 = vld [vmem:[%s437_s1 + $0xb0] sm:$0xff] }
   0x9   :  { %161 = vmatpush1.bf16.msra.mxu0 %v160_v13  ;;  %v174_v32 = vpack.c.bf16 %v36_v30, %v34_v29  ;;  %v38_v35 = vld [vmem:[%s437_s1 + $0xc8] sm:$0xff]  ;;  %v40_v36 = vld [vmem:[%s437_s1 + $0xd8] sm:$0xff]  ;;  %v176_v37 = vpack.c.bf16 %v35_v34, %v33_v33  ;;  %v37_v39 = vld [vmem:[%s437_s1 + $0xc0] sm:$0xff] }
   0xa   :  { %163 = vmatprep.subr.bf16.mxu0 %v162_v14  ;;  %v178_v38 = vpack.c.bf16 %v40_v36, %v38_v35  ;;  %v39_v40 = vld [vmem:[%s437_s1 + $0xd0] sm:$0xff]  ;;  %v12_v41 = vld [vmem:[%s438_s0 + $0x8] sm:$0xff]  ;;  %v44_v43 = vld [vmem:[%s437_s1 + $0xf8] sm:$0xff] }
   0xb   :  { %v42_v42 = vld [vmem:[%s437_s1 + $0xe8] sm:$0xff]  ;;  %141 = vmatprep.mubr.f32.mxu0 %v12_v41  ;;  %v180_v44 = vpack.c.bf16 %v39_v40, %v37_v39  ;;  %v41_v46 = vld [vmem:[%s437_s1 + $0xe0] sm:$0xff]  ;;  %v43_v47 = vld [vmem:[%s437_s1 + $0xf0] sm:$0xff] }
   0xc   :  { %v182_v45 = vpack.c.bf16 %v44_v43, %v42_v42  ;;  %v46_v48 = vld [vmem:[%s437_s1 + $0x108] sm:$0xff]  ;;  %v48_v49 = vld [vmem:[%s437_s1 + $0x118] sm:$0xff]  ;;  %v184_v50 = vpack.c.bf16 %v43_v47, %v41_v46  ;;  %v45_v52 = vld [vmem:[%s437_s1 + $0x100] sm:$0xff] }
   0xd   :  { %165 = vmatpush1.bf16.msra.mxu0 %v164_v19  ;;  %v186_v51 = vpack.c.bf16 %v48_v49, %v46_v48  ;;  %v47_v53 = vld [vmem:[%s437_s1 + $0x110] sm:$0xff]  ;;  %v50_v54 = vld [vmem:[%s437_s1 + $0x128] sm:$0xff]  ;;  %v52_v55 = vld [vmem:[%s437_s1 + $0x138] sm:$0xff] }
   0xe   :  { %167 = vmatprep.subr.bf16.mxu0 %v166_v20  ;;  %v188_v56 = vpack.c.bf16 %v47_v53, %v45_v52  ;;  %v190_v57 = vpack.c.bf16 %v52_v55, %v50_v54  ;;  %v49_v58 = vld [vmem:[%s437_s1 + $0x120] sm:$0xff]  ;;  %v51_v59 = vld [vmem:[%s437_s1 + $0x130] sm:$0xff]  ;;  %v54_v60 = vld [vmem:[%s437_s1 + $0x148] sm:$0xff] }
   0xf   :  { %v56_v61 = vld [vmem:[%s437_s1 + $0x158] sm:$0xff]  ;;  %v192_v62 = vpack.c.bf16 %v51_v59, %v49_v58  ;;  %v53_v0 = vld [vmem:[%s437_s1 + $0x140] sm:$0xff]  ;;  %v55_v1 = vld [vmem:[%s437_s1 + $0x150] sm:$0xff] }
  0x10   :  { %v194_v63 = vpack.c.bf16 %v56_v61, %v54_v60  ;;  %v58_v2 = vld [vmem:[%s437_s1 + $0x168] sm:$0xff]  ;;  %v60_v3 = vld [vmem:[%s437_s1 + $0x178] sm:$0xff]  ;;  %v196_v4 = vpack.c.bf16 %v55_v1, %v53_v0  ;;  %v57_v6 = vld [vmem:[%s437_s1 + $0x160] sm:$0xff] }
  0x11   :  { %169 = vmatpush1.bf16.msra.mxu0 %v168_v25  ;;  %v198_v5 = vpack.c.bf16 %v60_v3, %v58_v2  ;;  %v59_v7 = vld [vmem:[%s437_s1 + $0x170] sm:$0xff]  ;;  %v62_v8 = vld [vmem:[%s437_s1 + $0x188] sm:$0xff]  ;;  %v64_v9 = vld [vmem:[%s437_s1 + $0x198] sm:$0xff] }
  0x12   :  { %171 = vmatprep.subr.bf16.mxu0 %v170_v26  ;;  %v200_v10 = vpack.c.bf16 %v59_v7, %v57_v6  ;;  %v202_v11 = vpack.c.bf16 %v64_v9, %v62_v8  ;;  %v61_v12 = vld [vmem:[%s437_s1 + $0x180] sm:$0xff]  ;;  %v63_v13 = vld [vmem:[%s437_s1 + $0x190] sm:$0xff]  ;;  %v66_v14 = vld [vmem:[%s437_s1 + $0x1a8] sm:$0xff] }
  0x13   :  { %v68_v15 = vld [vmem:[%s437_s1 + $0x1b8] sm:$0xff]  ;;  %v204_v16 = vpack.c.bf16 %v63_v13, %v61_v12  ;;  %v65_v18 = vld [vmem:[%s437_s1 + $0x1a0] sm:$0xff]  ;;  %v67_v19 = vld [vmem:[%s437_s1 + $0x1b0] sm:$0xff] }
  0x14   :  { %v206_v17 = vpack.c.bf16 %v68_v15, %v66_v14  ;;  %v70_v20 = vld [vmem:[%s437_s1 + $0x1c8] sm:$0xff]  ;;  %v72_v21 = vld [vmem:[%s437_s1 + $0x1d8] sm:$0xff]  ;;  %v208_v22 = vpack.c.bf16 %v67_v19, %v65_v18  ;;  %v69_v24 = vld [vmem:[%s437_s1 + $0x1c0] sm:$0xff] }
  0x15   :  { %173 = vmatpush1.bf16.msra.mxu0 %v172_v31  ;;  %v210_v23 = vpack.c.bf16 %v72_v21, %v70_v20  ;;  %v71_v25 = vld [vmem:[%s437_s1 + $0x1d0] sm:$0xff]  ;;  %v74_v26 = vld [vmem:[%s437_s1 + $0x1e8] sm:$0xff]  ;;  %v76_v27 = vld [vmem:[%s437_s1 + $0x1f8] sm:$0xff] }
  0x16   :  { %175 = vmatprep.subr.bf16.mxu0 %v174_v32  ;;  %v212_v28 = vpack.c.bf16 %v71_v25, %v69_v24  ;;  %v214_v29 = vpack.c.bf16 %v76_v27, %v74_v26  ;;  %v73_v30 = vld [vmem:[%s437_s1 + $0x1e0] sm:$0xff]  ;;  %v75_v31 = vld [vmem:[%s437_s1 + $0x1f0] sm:$0xff] }
  0x17   :  { %v216_v32 = vpack.c.bf16 %v75_v31, %v73_v30  ;;  %v11_v33 = vld [vmem:[%s438_s0] sm:$0xff] }
  0x19   :  { %177 = vmatpush1.bf16.msra.mxu0 %v176_v37 }
  0x1a   :  { %179 = vmatprep.subr.bf16.mxu0 %v178_v38 }
  0x1d   :  { %181 = vmatpush1.bf16.msra.mxu0 %v180_v44 }
  0x1e   :  { %183 = vmatprep.subr.bf16.mxu0 %v182_v45 }
  0x21   :  { %185 = vmatpush1.bf16.msra.mxu0 %v184_v50 }
  0x22   :  { %187 = vmatprep.subr.bf16.mxu0 %v186_v51 }
  0x25   :  { %189 = vmatpush1.bf16.msra.mxu0 %v188_v56 }
  0x26   :  { %191 = vmatprep.subr.bf16.mxu0 %v190_v57 }
  0x29   :  { %193 = vmatpush1.bf16.msra.mxu0 %v192_v62 }
  0x2a   :  { %195 = vmatprep.subr.bf16.mxu0 %v194_v63 }
  0x2d   :  { %197 = vmatpush1.bf16.msra.mxu0 %v196_v4 }
  0x2e   :  { %199 = vmatprep.subr.bf16.mxu0 %v198_v5 }
  0x31   :  { %201 = vmatpush1.bf16.msra.mxu0 %v200_v10 }
  0x32   :  { %203 = vmatprep.subr.bf16.mxu0 %v202_v11 }
  0x35   :  { %205 = vmatpush1.bf16.msra.mxu0 %v204_v16 }
  0x36   :  { %207 = vmatprep.subr.bf16.mxu0 %v206_v17 }
  0x39   :  { %209 = vmatpush1.bf16.msra.mxu0 %v208_v22 }
  0x3a   :  { %211 = vmatprep.subr.bf16.mxu0 %v210_v23 }
  0x3d   :  { %213 = vmatpush1.bf16.msra.mxu0 %v212_v28 }
  0x3e   :  { %215 = vmatprep.subr.bf16.mxu0 %v214_v29 }
  0x41   :  { %217 = vmatpush1.bf16.msra.mxu0 %v216_v32 }
  0x44   :  { %142 = vmatmul.mubr.f32.vlgmr.msra.gmra.mrb[0].mxu0 %v11_v33 }
 0x117   :  { %v143_v34 = vpop.f32.mrb[0].mxu0 }
 0x118   :  { %148 = vst [vmem:[%s439_s2] sm:$0xff] %v143_v34  ;;  %v145_v35 = vpop.f32.mrb[1].mxu0 }
 0x119   :  { %149 = vst [vmem:[%s439_s2 + $0x8] sm:$0xff] %v145_v35 }

</bundles_post_ra>
